<compile_context>
chip_gen: v7x
topology: tpu7x:2x2x1
jax: 0.10.0
libtpu: 0.0.40
codegen_flags: <defaults>
</compile_context>

<pallas_src>
import jax
import jax.numpy as jnp
from jax.experimental import pallas as pl
from jax.experimental.pallas import tpu as pltpu

_BN_EPS = 1e-5


def _round_up(n, m):
    return ((n + m - 1) // m) * m


def _fc1_stats_kernel(x_ref, w1_ref, h_ref, sum_ref, ssq_ref):
    # Zero the resident stat accumulators on the first batch tile.
    @pl.when(pl.program_id(0) == 0)
    def _():
        sum_ref[...] = jnp.zeros_like(sum_ref)
        ssq_ref[...] = jnp.zeros_like(ssq_ref)

    # fc1 (no bias: cancelled by the BN mean subtraction). MXU, f32 accumulate.
    h = jnp.dot(x_ref[...], w1_ref[...], preferred_element_type=jnp.float32)
    h_ref[...] = h
    # One-pass statistics: per-feature sum and sum of squares (f32).
    sum_ref[...] += jnp.sum(h, axis=0, keepdims=True)
    ssq_ref[...] += jnp.sum(h * h, axis=0, keepdims=True)


def _make_bn_sigmoid_fc2_kernel(inv_batch):
    def kernel(h_ref, sum_ref, ssq_ref, gamma_ref, beta_ref, w2_ref, b2_ref, o_ref):
        # Finalize batch statistics (divide by the TRUE batch size; padded rows
        # contributed exactly zero because h == 0 there with b1 dropped).
        mean = sum_ref[...] * inv_batch
        var = jnp.maximum(ssq_ref[...] * inv_batch - mean * mean, 0.0)
        inv_std = jax.lax.rsqrt(var + _BN_EPS)
        # Fused BN affine: a single scale/shift per element.
        scale = inv_std * gamma_ref[...]            # (1, hid_p)
        shift = beta_ref[...] - mean * scale        # (1, hid_p)
        hn = h_ref[...] * scale + shift
        # Sigmoid via one EUP tanh (avoids the full-precision VALU divide).
        s = 0.5 * jnp.tanh(0.5 * hn) + 0.5
        # fc2 on the MXU (lane-dense padded output), f32 accumulate + bias.
        out = jnp.dot(s.astype(w2_ref.dtype), w2_ref[...],
                      preferred_element_type=jnp.float32) + b2_ref[...]
        o_ref[...] = out
    return kernel


def nn1_forward(x, w1, b1, gamma, beta, w2, b2, *,
                block_rows=512, compute_dtype=jnp.bfloat16):
    """Forward pass of NN1 (training-mode BatchNorm over the batch axis).

    x: (B, numin); w1: (numin, numhid); w2: (numhid, numout) (pre-transposed).
    b1 is accepted for API parity with the PyTorch module but is unused: the
    batch-mean subtraction in BatchNorm1d cancels it exactly.
    """
    del b1
    f32 = jnp.float32
    B, numin = x.shape
    numhid = w1.shape[1]
    numout = w2.shape[1]

    # Lane-dense padded feature dims; batch tiled into tm-row blocks.
    hid_p = _round_up(numhid, 128)
    nout_p = _round_up(numout, 128)
    tm = min(block_rows, _round_up(B, 8))
    b_pad = _round_up(B, tm)
    nbt = b_pad // tm

    # Pad once in the wrapper (zero w1 columns + no bias => padded hidden
    # features give h == 0 exactly, and zero w2 rows keep them out of the
    # output; zero-padded batch rows contribute nothing to the statistics).
    x_p = jnp.zeros((b_pad, numin), compute_dtype).at[:B].set(x.astype(compute_dtype))
    w1_p = jnp.zeros((numin, hid_p), compute_dtype).at[:, :numhid].set(
        w1.astype(compute_dtype))
    gamma_p = jnp.zeros((1, hid_p), f32).at[:, :numhid].set(
        gamma.reshape(1, -1).astype(f32))
    beta_p = jnp.zeros((1, hid_p), f32).at[:, :numhid].set(
        beta.reshape(1, -1).astype(f32))
    w2_p = jnp.zeros((hid_p, nout_p), compute_dtype).at[:numhid, :numout].set(
        w2.astype(compute_dtype))
    b2_p = jnp.zeros((1, nout_p), f32).at[:, :numout].set(
        b2.reshape(1, -1).astype(f32))

    # Pass 1: fc1 + batch-statistics accumulation (stats resident across tiles).
    h, hsum, hssq = pl.pallas_call(
        _fc1_stats_kernel,
        grid=(nbt,),
        in_specs=[
            pl.BlockSpec((tm, numin), lambda i: (i, 0)),      # x tile
            pl.BlockSpec((numin, hid_p), lambda i: (0, 0)),   # w1 (resident)
        ],
        out_specs=[
            pl.BlockSpec((tm, hid_p), lambda i: (i, 0)),      # staged h
            pl.BlockSpec((1, hid_p), lambda i: (0, 0)),       # sum accumulator
            pl.BlockSpec((1, hid_p), lambda i: (0, 0)),       # sumsq accumulator
        ],
        out_shape=[
            jax.ShapeDtypeStruct((b_pad, hid_p), f32),
            jax.ShapeDtypeStruct((1, hid_p), f32),
            jax.ShapeDtypeStruct((1, hid_p), f32),
        ],
        compiler_params=pltpu.CompilerParams(
            dimension_semantics=("arbitrary",)),  # reduction over batch tiles
    )(x_p, w1_p)

    # Pass 2: fused BN scale/shift + sigmoid + fc2, independent per batch tile.
    inv_b = 1.0 / float(B)  # true batch size, not the padded one
    out_p = pl.pallas_call(
        _make_bn_sigmoid_fc2_kernel(inv_b),
        grid=(nbt,),
        in_specs=[
            pl.BlockSpec((tm, hid_p), lambda i: (i, 0)),      # h tile
            pl.BlockSpec((1, hid_p), lambda i: (0, 0)),       # sum
            pl.BlockSpec((1, hid_p), lambda i: (0, 0)),       # sumsq
            pl.BlockSpec((1, hid_p), lambda i: (0, 0)),       # gamma
            pl.BlockSpec((1, hid_p), lambda i: (0, 0)),       # beta
            pl.BlockSpec((hid_p, nout_p), lambda i: (0, 0)),  # w2 (resident)
            pl.BlockSpec((1, nout_p), lambda i: (0, 0)),      # b2
        ],
        out_specs=pl.BlockSpec((tm, nout_p), lambda i: (i, 0)),
        out_shape=jax.ShapeDtypeStruct((b_pad, nout_p), f32),
        compiler_params=pltpu.CompilerParams(
            dimension_semantics=("parallel",)),  # shard tiles across TCs (v7x)
    )(h, hsum, hssq, gamma_p, beta_p, w2_p, b2_p)

    return out_p[:B, :numout]


def init_params(key, numin, numhid, numout):
    """Deterministic synthetic parameters (PyTorch-style uniform fan-in init)."""
    k1, k2, k3, k4 = jax.random.split(key, 4)
    bound1 = 1.0 / jnp.sqrt(numin)
    bound2 = 1.0 / jnp.sqrt(numhid)
    # Linear weights stored already transposed: (in, out).
    w1 = jax.random.uniform(k1, (numin, numhid), jnp.float32, -bound1, bound1)
    b1 = jax.random.uniform(k2, (1, numhid), jnp.float32, -bound1, bound1)
    gamma = jnp.ones((1, numhid), jnp.float32)   # BatchNorm1d weight init
    beta = jnp.zeros((1, numhid), jnp.float32)   # BatchNorm1d bias init
    w2 = jax.random.uniform(k3, (numhid, numout), jnp.float32, -bound2, bound2)
    b2 = jax.random.uniform(k4, (1, numout), jnp.float32, -bound2, bound2)
    return w1, b1, gamma, beta, w2, b2


def reference_forward(x, w1, b1, gamma, beta, w2, b2):
    """Faithful f32 JAX port of the PyTorch module (training-mode BatchNorm)."""
    h = x @ w1 + b1
    mean = jnp.mean(h, axis=0, keepdims=True)
    var = jnp.mean((h - mean) ** 2, axis=0, keepdims=True)
    hn = (h - mean) / jnp.sqrt(var + _BN_EPS) * gamma + beta
    s = jax.nn.sigmoid(hn)
    return s @ w2 + b2


if __name__ == "__main__":
    B, numin, numhid, numout = 8, 16, 32, 4

    key = jax.random.PRNGKey(0)
    kx, kp = jax.random.split(key)
    x = jax.random.normal(kx, (B, numin), jnp.float32)
    params = init_params(kp, numin, numhid, numout)

    ref = reference_forward(x, *params)

    # f32 MXU operands: tight check of the algebraic restructuring
    # (dropped b1, fused BN scale/shift, one-pass stats, tanh-sigmoid).
    out_f32 = jax.block_until_ready(
        nn1_forward(x, *params, compute_dtype=jnp.float32))
    assert out_f32.shape == (B, numout)
    assert jnp.allclose(out_f32, ref, atol=1e-4, rtol=1e-4), "f32 mismatch vs reference"

    # Default (performance) config: bf16 operands into the MXU, f32 accumulate.
    out_bf16 = jax.block_until_ready(nn1_forward(x, *params))
    assert out_bf16.shape == (B, numout)
    assert jnp.allclose(out_bf16, ref, atol=5e-2, rtol=5e-2), "bf16 mismatch vs reference"

    print("KERNEL_OK")
</pallas_src>

<mosaic_0001>
module attributes {stable_mosaic.version = 11 : i64} {
  func.func @_fc1_stats_kernel(%arg0: i32, %arg1: memref<8x16xf32, #tpu.memory_space<vmem>>, %arg2: memref<16x128xf32, #tpu.memory_space<vmem>>, %arg3: memref<8x128xf32, #tpu.memory_space<vmem>>, %arg4: memref<1x128xf32, #tpu.memory_space<vmem>>, %arg5: memref<1x128xf32, #tpu.memory_space<vmem>>) attributes {dimension_semantics = [#tpu.dimension_semantics<arbitrary>], iteration_bounds = array<i64: 1>, scalar_prefetch = 0 : i64, scratch_operands = 0 : i64, tpu.core_type = #tpu.core_type<tc>, window_params = [{transform_indices = @transform_0, window_bounds = array<i64: 8, 16>}, {pipeline_mode = #tpu.pipeline_mode<synchronous>, transform_indices = @transform_1, window_bounds = array<i64: 16, 128>}, {transform_indices = @transform_2, window_bounds = array<i64: 8, 128>}, {pipeline_mode = #tpu.pipeline_mode<synchronous>, transform_indices = @transform_3, window_bounds = array<i64: 1, 128>}, {pipeline_mode = #tpu.pipeline_mode<synchronous>, transform_indices = @transform_4, window_bounds = array<i64: 1, 128>}]} {
    %c0_i32 = arith.constant 0 : i32
    %0 = arith.cmpi eq, %arg0, %c0_i32 : i32
    %1 = arith.extui %0 : i1 to i32
    %c0_i32_0 = arith.constant 0 : i32
    %2 = arith.cmpi ne, %1, %c0_i32_0 : i32
    scf.if %2 {
      %cst_16 = arith.constant 0.000000e+00 : f32
      %18 = vector.broadcast %cst_16 : f32 to vector<1x128xf32>
      %c0_17 = arith.constant 0 : index
      %c0_18 = arith.constant 0 : index
      %19 = vector.load %arg4[%c0_17, %c0_18] : memref<1x128xf32, #tpu.memory_space<vmem>>, vector<1x128xf32>
      tpu.vector_store %arg4[%c0_17, %c0_18], %18 {strides = array<i32>} : memref<1x128xf32, #tpu.memory_space<vmem>>, vector<1x128xf32>,
      %cst_19 = arith.constant 0.000000e+00 : f32
      %20 = vector.broadcast %cst_19 : f32 to vector<1x128xf32>
      %c0_20 = arith.constant 0 : index
      %c0_21 = arith.constant 0 : index
      %21 = vector.load %arg5[%c0_20, %c0_21] : memref<1x128xf32, #tpu.memory_space<vmem>>, vector<1x128xf32>
      tpu.vector_store %arg5[%c0_20, %c0_21], %20 {strides = array<i32>} : memref<1x128xf32, #tpu.memory_space<vmem>>, vector<1x128xf32>,
    } else {
    }
    %c0 = arith.constant 0 : index
    %c0_1 = arith.constant 0 : index
    %3 = vector.load %arg1[%c0, %c0_1] : memref<8x16xf32, #tpu.memory_space<vmem>>, vector<8x16xf32>
    %c0_2 = arith.constant 0 : index
    %c0_3 = arith.constant 0 : index
    %4 = vector.load %arg2[%c0_2, %c0_3] : memref<16x128xf32, #tpu.memory_space<vmem>>, vector<16x128xf32>
    %cst = arith.constant dense<0.000000e+00> : vector<8x128xf32>
    %5 = tpu.matmul %3, %4, %cst {dimension_numbers = #tpu.dot_dimension_numbers<[1], [0], [0], [1], [0, 0, 1, 1], [], []>} : vector<8x16xf32>, vector<16x128xf32>, vector<8x128xf32> -> vector<8x128xf32>
    %c0_4 = arith.constant 0 : index
    %c0_5 = arith.constant 0 : index
    %6 = vector.load %arg3[%c0_4, %c0_5] : memref<8x128xf32, #tpu.memory_space<vmem>>, vector<8x128xf32>
    tpu.vector_store %arg3[%c0_4, %c0_5], %5 {strides = array<i32>} : memref<8x128xf32, #tpu.memory_space<vmem>>, vector<8x128xf32>,
    %c0_6 = arith.constant 0 : index
    %c0_7 = arith.constant 0 : index
    %7 = vector.load %arg4[%c0_6, %c0_7] : memref<1x128xf32, #tpu.memory_space<vmem>>, vector<1x128xf32>
    %cst_8 = arith.constant dense<0.000000e+00> : vector<128xf32>
    %8 = vector.multi_reduction <add>, %5, %cst_8 [0] : vector<8x128xf32> to vector<128xf32>
    %9 = vector.shape_cast %8 : vector<128xf32> to vector<1x128xf32>
    %10 = arith.addf %7, %9 : vector<1x128xf32>
    %c0_9 = arith.constant 0 : index
    %c0_10 = arith.constant 0 : index
    %11 = vector.load %arg4[%c0_9, %c0_10] : memref<1x128xf32, #tpu.memory_space<vmem>>, vector<1x128xf32>
    tpu.vector_store %arg4[%c0_9, %c0_10], %10 {strides = array<i32>} : memref<1x128xf32, #tpu.memory_space<vmem>>, vector<1x128xf32>,
    %c0_11 = arith.constant 0 : index
    %c0_12 = arith.constant 0 : index
    %12 = vector.load %arg5[%c0_11, %c0_12] : memref<1x128xf32, #tpu.memory_space<vmem>>, vector<1x128xf32>
    %13 = arith.mulf %5, %5 : vector<8x128xf32>
    %cst_13 = arith.constant dense<0.000000e+00> : vector<128xf32>
    %14 = vector.multi_reduction <add>, %13, %cst_13 [0] : vector<8x128xf32> to vector<128xf32>
    %15 = vector.shape_cast %14 : vector<128xf32> to vector<1x128xf32>
    %16 = arith.addf %12, %15 : vector<1x128xf32>
    %c0_14 = arith.constant 0 : index
    %c0_15 = arith.constant 0 : index
    %17 = vector.load %arg5[%c0_14, %c0_15] : memref<1x128xf32, #tpu.memory_space<vmem>>, vector<1x128xf32>
    tpu.vector_store %arg5[%c0_14, %c0_15], %16 {strides = array<i32>} : memref<1x128xf32, #tpu.memory_space<vmem>>, vector<1x128xf32>,
    return
  }
  func.func @transform_0(%arg0: i32) -> (i32, i32) {
    %c0_i32 = arith.constant 0 : i32
    %c0_i32_0 = arith.constant 0 : i32
    return %arg0, %c0_i32 : i32, i32
  }
  func.func @transform_1(%arg0: i32) -> (i32, i32) {
    %c0_i32 = arith.constant 0 : i32
    %c0_i32_0 = arith.constant 0 : i32
    %c0_i32_1 = arith.constant 0 : i32
    return %c0_i32, %c0_i32_0 : i32, i32
  }
  func.func @transform_2(%arg0: i32) -> (i32, i32) {
    %c0_i32 = arith.constant 0 : i32
    %c0_i32_0 = arith.constant 0 : i32
    return %arg0, %c0_i32 : i32, i32
  }
  func.func @transform_3(%arg0: i32) -> (i32, i32) {
    %c0_i32 = arith.constant 0 : i32
    %c0_i32_0 = arith.constant 0 : i32
    %c0_i32_1 = arith.constant 0 : i32
    return %c0_i32, %c0_i32_0 : i32, i32
  }
  func.func @transform_4(%arg0: i32) -> (i32, i32) {
    %c0_i32 = arith.constant 0 : i32
    %c0_i32_0 = arith.constant 0 : i32
    %c0_i32_1 = arith.constant 0 : i32
    return %c0_i32, %c0_i32_0 : i32, i32
  }
}

</mosaic_0001>

<bundles_post_ra>
// kernel: tpu_custom_call.1
= control target key start
LH: loop header
LB: loop body
LE: loop exit
PB: predicated region body
PF: predicated region fallthrough
CT: control target
= control target key end

     0   :  { %10 = vsyncpa [#allocation3], 0  ;;  %s440_s0 = inlined_call_operand.hbm [shape: f32[8,16], index: 0, kind: input, shape index: {}]   ;;  %s441_s1 = inlined_call_operand.hbm [shape: f32[16,128], index: 1, kind: input, shape index: {}]   ;;  %s442_s2 = inlined_call_operand.hbm [shape: f32[8,128], index: 2, kind: output, shape index: {0}]   ;;  %s443_s3 = inlined_call_operand.hbm [shape: f32[1,128], index: 3, kind: output, shape index: {1}]   ;;  %s444_s4 = inlined_call_operand.hbm [shape: f32[1,128], index: 4, kind: output, shape index: {2}]  }
   0x1   :  { %11 = vsyncpa [#allocation6], 0 }
   0x2   :  { %12 = vsyncpa [#allocation4], 0 }
   0x3   :  { %13 = vsyncpa [#allocation9], 0  ;;  %s330_s15 = smov [#allocation2]   ;;  %s331_s17 = smov [#allocation5]  }
   0x4   :  { %s20_s16 = sshll.u32 %s330_s15, 4  ;;  %s29_s18 = sshll.u32 %s331_s17, 4  ;;  %s21_s16 = int_to_ptr.vmem [resolvable:$true] %s20_s16  ;;  %s365_s18 = int_to_ptr.vmem [resolvable:$true] %s29_s18 }
   0x5   :  { %s212_s21 = scalar_lea.hbm %s440_s0, 128 }
   0x6   :  { %p213_p0 = scmp.ne.s32.totalorder %s440_s0, %s212_s21  ;;  %p216_p1 = scmp.lt.u32.totalorder %s212_s21, %s440_s0 }
   0x8   :  { %p218_p2 = pnand %p216_p1, %p213_p0 }
   0xa   :  { %221 = shalt.err (!%p218_p2)
}
   0xb   :  { %s222_s26 = scalar_lea.vmem %s21_s16, 128  ;;  %p227_p4 = scmp.lt.s32.totalorder %s21_s16, %s21_s16 }
   0xc   :  { %p223_p3 = scmp.ne.s32.totalorder %s21_s16, %s222_s26  ;;  %p228_p5 = scmp.lt.s32.totalorder %s222_s26, %s222_s26 }
   0xe   :  { %p229_p6 = por %p228_p5, %p227_p4 }
  0x10   :  { %p230_p7 = pnand %p229_p6, %p223_p3 }
  0x12   :  { %233 = shalt.err (!%p230_p7)
}
  0x13   :  { %23 = dma.hbm_to_vmem [thread:$0]  %s440_s0, 128, %s21_s16, [#allocation3]  }
  0x14   :  { %s234_s5 = scalar_lea.hbm %s441_s1, 256 }
  0x15   :  { %p235_p8 = scmp.ne.s32.totalorder %s441_s1, %s234_s5  ;;  %p238_p9 = scmp.lt.u32.totalorder %s234_s5, %s441_s1 }
  0x17   :  { %p240_p10 = pnand %p238_p9, %p235_p8 }
  0x19   :  { %243 = shalt.err (!%p240_p10)
}
  0x1a   :  { %s244_s10 = scalar_lea.vmem %s365_s18, 256  ;;  %p249_p12 = scmp.lt.s32.totalorder %s365_s18, %s365_s18 }
  0x1b   :  { %p245_p11 = scmp.ne.s32.totalorder %s365_s18, %s244_s10  ;;  %p250_p13 = scmp.lt.s32.totalorder %s244_s10, %s244_s10 }
  0x1d   :  { %p251_p0 = por %p250_p13, %p249_p12 }
  0x1f   :  { %p252_p1 = pnand %p251_p0, %p245_p11 }
  0x21   :  { %255 = shalt.err (!%p252_p1)
}
  0x22   :  { %s332_s0 = smov 128   ;;  %s333_s11 = smov 8  }
  0x23   :  { %35 = dma.hbm_to_vmem [thread:$0]  %s441_s1, 256, %s365_s18, [#allocation6], %s332_s0, %s332_s0, %s333_s11  }
  0x24   :  { %322 = dma.done.wait [#allocation3], 128  }
  0x25   :  { %323 = vsyncadd [#allocation3], 4294967168 }
  0x26   :  { %324 = dma.done.wait [#allocation6], 256  }
  0x27   :  { %325 = vsyncadd [#allocation6], 4294967040  ;;  %v334_v0 = vmov 0.0|0.0   ;;  %v335_v1 = vmov 0.0   ;;  %vm336_vm0 = vmmov 0   ;;  %v49_v2 = vld [vmem:[#allocation5] sm:$0xff] }
  0x28   :  { %199 = vmatprep.subr.bf16.mxu0 %v334_v0  ;;  %46 = vst [vmem:[#allocation8] sm:$0x1] %v335_v1  ;;  %47 = vst [vmem:[#allocation10] sm:$0x1] %v335_v1  ;;  %196 = vmatprep.mubr.msk.f32.mxu0 %vm336_vm0, %v335_v1  ;;  %v50_v3 = vld [vmem:[#allocation5 + $0x8] sm:$0xff]  ;;  %v48_v5 = vld [vmem:[#allocation2] sm:$0xff] }
  0x29   :  { %v200_v4 = vpack.c.bf16 %v50_v3, %v49_v2  ;;  %vm51_vm1 = vcmask 130048   ;;  %s337_s14 = smov [#allocation7]  }
  0x2a   :  { %s151_s1 = sshll.u32 %s337_s14, 4  ;;  %s152_s1 = int_to_ptr.vmem [resolvable:$true] %s151_s1 }
  0x2b   :  { %201 = vmatpush3.bf16.msra.mxu0 %v200_v4  ;;  %s256_s15 = scalar_lea.vmem %s152_s1, 128  ;;  %p261_p3 = scmp.lt.s32.totalorder %s152_s1, %s152_s1 }
  0x2c   :  { %p257_p2 = scmp.ne.s32.totalorder %s152_s1, %s256_s15  ;;  %p262_p4 = scmp.lt.s32.totalorder %s256_s15, %s256_s15 }
  0x2e   :  { %197 = vmatmul.mubr.msk.f32.vlgmr.msra.gmra.mrb[0].mxu0 %vm51_vm1, %v48_v5  ;;  %p263_p5 = por %p262_p4, %p261_p3 }
  0x30   :  { %p264_p6 = pnand %p263_p5, %p257_p2 }
 0x101   :  { %v121_v6 = vpop.f32.mrb[0].mxu0 }
 0x102   :  { %v127_v7 = vrot.slane %v121_v6, 4  ;;  %v136_v8 = vmul.f32 %v121_v6, %v121_v6  ;;  %125 = vst [vmem:[#allocation7] sm:$0xff] %v121_v6  ;;  %v198_v9 = vpop.f32.mrb[1].mxu0 }
 0x103   :  { %267 = shalt.err (!%p264_p6)
}
 0x104   :  { %s268_s18 = scalar_lea.hbm %s442_s2, 128 }
 0x105   :  { %p269_p7 = scmp.ne.s32.totalorder %s442_s2, %s268_s18  ;;  %p272_p8 = scmp.lt.u32.totalorder %s268_s18, %s442_s2 }
 0x107   :  { %p274_p9 = pnand %p272_p8, %p269_p7 }
 0x109   :  { %277 = shalt.err (!%p274_p9)
}
 0x10a   :  { %154 = dma.vmem_to_hbm [thread:$0]  %s152_s1, 128, %s442_s2, [#allocation4]   ;;  %v128_v10 = vadd.f32 %v127_v7, %v121_v6  ;;  %v137_v11 = vrot.slane %v136_v8, 4  ;;  %v126_v18 = vld [vmem:[#allocation8] sm:$0x1] }
 0x10b   :  { %s338_s25 = smov [#allocation8]   ;;  %v135_v21 = vld [vmem:[#allocation10] sm:$0x1]  ;;  %s339_s27 = smov [#allocation10]  }
 0x10c   :  { %v129_v12 = vrot.slane %v128_v10, 2  ;;  %v138_v13 = vadd.f32 %v137_v11, %v136_v8  ;;  %s161_s26 = sshll.u32 %s338_s25, 4  ;;  %s171_s28 = sshll.u32 %s339_s27, 4  ;;  %s162_s26 = int_to_ptr.vmem [resolvable:$true] %s161_s26  ;;  %s408_s28 = int_to_ptr.vmem [resolvable:$true] %s171_s28 }
 0x10d   :  { %s278_s2 = scalar_lea.vmem %s162_s26, 16  ;;  %s282_s29 = scalar_lea.vmem %s162_s26, 32 }
 0x10e   :  { %v130_v14 = vadd.f32 %v129_v12, %v128_v10  ;;  %v139_v15 = vrot.slane %v138_v13, 2  ;;  %p279_p10 = scmp.ne.s32.totalorder %s162_s26, %s278_s2  ;;  %p283_p11 = scmp.lt.s32.totalorder %s162_s26, %s162_s26 }
 0x10f   :  { %p284_p12 = scmp.lt.s32.totalorder %s282_s29, %s278_s2 }
 0x110   :  { %v131_v16 = vrot.slane %v130_v14, 1  ;;  %v140_v17 = vadd.f32 %v139_v15, %v138_v13 }
 0x111   :  { %p285_p13 = por %p284_p12, %p283_p11 }
 0x112   :  { %v141_v19 = vrot.slane %v140_v17, 1  ;;  %v132_v20 = vadd.f32 %v131_v16, %v130_v14 }
 0x113   :  { %p286_p0 = pnand %p285_p13, %p279_p10 }
 0x114   :  { %v133_v22 = vadd.f32 %v132_v20, %v126_v18  ;;  %v142_v23 = vadd.f32 %v141_v19, %v140_v17 }
 0x116   :  { %134 = vst [vmem:[#allocation8] sm:$0x1] %v133_v22  ;;  %v143_v24 = vadd.f32 %v142_v23, %v135_v21 }
 0x117   :  { %289 = shalt.err (!%p286_p0)
}
 0x118   :  { %s290_s6 = scalar_lea.hbm %s443_s3, 16 }
 0x119   :  { %p291_p1 = scmp.ne.s32.totalorder %s443_s3, %s290_s6  ;;  %p294_p2 = scmp.lt.u32.totalorder %s290_s6, %s443_s3 }
 0x11b   :  { %p296_p3 = pnand %p294_p2, %p291_p1 }
 0x11d   :  { %299 = shalt.err (!%p296_p3)
}
 0x11e   :  { %164 = dma.vmem_to_hbm [thread:$0]  %s162_s26, 16, %s443_s3, [#allocation9]   ;;  %144 = vst [vmem:[#allocation10] sm:$0x1] %v143_v24 }
 0x11f   :  { %s300_s12 = scalar_lea.vmem %s408_s28, 16  ;;  %s304_s13 = scalar_lea.vmem %s408_s28, 32 }
 0x120   :  { %p301_p4 = scmp.ne.s32.totalorder %s408_s28, %s300_s12  ;;  %p305_p5 = scmp.lt.s32.totalorder %s408_s28, %s408_s28 }
 0x121   :  { %p306_p6 = scmp.lt.s32.totalorder %s304_s13, %s300_s12 }
 0x123   :  { %p307_p7 = por %p306_p6, %p305_p5 }
 0x125   :  { %p308_p8 = pnand %p307_p7, %p301_p4 }
 0x127   :  { %311 = shalt.err (!%p308_p8)
}
 0x128   :  { %s312_s15 = scalar_lea.hbm %s444_s4, 16 }
 0x129   :  { %p313_p9 = scmp.ne.s32.totalorder %s444_s4, %s312_s15  ;;  %p316_p10 = scmp.lt.u32.totalorder %s312_s15, %s444_s4 }
 0x12b   :  { %p318_p11 = pnand %p316_p10, %p313_p9 }
 0x12d   :  { %321 = shalt.err (!%p318_p11)
}
 0x12e   :  { %174 = dma.vmem_to_hbm [thread:$0]  %s408_s28, 16, %s444_s4, [#allocation9]  }
 0x12f   :  { %326 = dma.done.wait [#allocation4], 128  }
 0x130   :  { %327 = vsyncadd [#allocation4], 4294967168 }
 0x131   :  { %328 = dma.done.wait [#allocation9], 32  }
 0x132   :  { %329 = vsyncadd [#allocation9], 4294967264 }
 0x133   :  { %184 = vsyncpa [#allocation3], 1 }
 0x134   :  { %185 = vsyncpa [#allocation6], 1 }
 0x135   :  { %186 = vsyncpa [#allocation4], 1 }
 0x136   :  { %187 = vsyncpa [#allocation9], 1 }

</bundles_post_ra>
